<compile_context>
chip_gen: v6e
topology: v6e:2x2x1
jax: 0.10.0
libtpu: 0.0.40
codegen_flags: <defaults>
</compile_context>

<pallas_src>
import functools

import jax
import jax.numpy as jnp
from jax.experimental import pallas as pl
from jax.experimental.pallas import tpu as pltpu


def _weighted_ce_kernel(n_rows, logits_ref, targets_ref, weights_ref, out_ref):
    x = logits_ref[...].astype(jnp.float32)               # (bN, C)
    t = targets_ref[...]                                   # (bN, 1) int32
    w = weights_ref[...].astype(jnp.float32)               # (1, C)
    bn, c = x.shape

    # numerically-stable logsumexp along the class axis; compute y = x - m once
    # and reuse it for both the exp (EUP) and the one-hot pick.
    m = jnp.max(x, axis=-1, keepdims=True)                                # (bN, 1)
    y = x - m                                                             # (bN, C)
    lse_m = jnp.log(jnp.sum(jnp.exp(y), axis=-1, keepdims=True))          # lse - m

    # one-hot "gather" of the target class via compare + select (no cross-lane
    # gather, and no 0*inf NaNs from non-target classes).
    cls = jax.lax.broadcasted_iota(jnp.int32, (bn, c), 1)
    hit = cls == t                                                        # (bN, C)
    y_t = jnp.sum(jnp.where(hit, y, 0.0), axis=-1, keepdims=True)         # x_t - m
    w_t = jnp.sum(jnp.where(hit, w, 0.0), axis=-1, keepdims=True)         # weight[t_i]

    nll = lse_m - y_t                      # (lse + m) - (x_t) with the +m cancelled

    # Mask tail rows of the (possibly partial) last block: logits are NOT padded
    # in HBM, so those VMEM rows hold garbage and must contribute exactly 0 to
    # both numerator and denominator (w_t==0 alone would not stop 0*NaN).
    rows = jax.lax.broadcasted_iota(jnp.int32, (bn, 1), 0)
    valid = (pl.program_id(0) * bn + rows) < n_rows
    nll = jnp.where(valid, nll, 0.0)
    w_t = jnp.where(valid, w_t, 0.0)

    num = jnp.sum(w_t * nll)               # block-partial numerator
    den = jnp.sum(w_t)                     # block-partial denominator

    # lane-dense (8, 128) partial tile: num at [0,0], den at [0,1], zeros elsewhere.
    row = jax.lax.broadcasted_iota(jnp.int32, (8, 128), 0)
    col = jax.lax.broadcasted_iota(jnp.int32, (8, 128), 1)
    tile = jnp.where((row == 0) & (col == 0), num, 0.0)
    tile = tile + jnp.where((row == 0) & (col == 1), den, 0.0)
    out_ref[...] = tile


def _kernel_plan(n, c, itemsize):
    """Generation-aware (block_n, vmem_limit_bytes) for the streaming grid."""
    c_pad = ((c + 127) // 128) * 128           # VMEM lane padding when C % 128 != 0
    try:
        cap = int(getattr(pltpu.get_tpu_info(), "vmem_capacity_bytes", 0)) or (128 << 20)
    except Exception:  # interpret mode / older runtimes
        cap = 128 << 20
    # scoped limit: ~80 MiB on 128-MiB chips (v5e/v6e), ~40 MiB on 64-MiB v7x
    vmem_limit = min(cap * 5 // 8, 96 << 20)
    budget = vmem_limit * 3 // 4               # headroom for outputs / Mosaic internals

    bytes_per_row = (
        2 * c_pad * itemsize       # double-buffered logits tile (input dtype)
        + 2 * 128 * 4              # double-buffered (block_n, 1) int32 targets, lane-padded
        + 4 * c_pad * 4            # f32 elementwise temps (cast, y, exp, select) kept live
    )
    bn = (budget // bytes_per_row) // 32 * 32
    if bn < 32:
        # TODO(synk): vocab-scale C should tile the class axis with an online
        # logsumexp instead of clamping to tiny row tiles.
        bn = 8
    gran = 16 if itemsize < 4 else 8           # bf16 sublane packing
    bn = min(bn, ((n + gran - 1) // gran) * gran)
    bn = max(bn, 8)
    return int(bn), int(vmem_limit)


def weighted_ce_loss(logits, targets, weights=None, *, block_n=None):
    """Forward pass of WeightedCELoss.

    logits:  (N, C) float logits (f32 or bf16; bf16 is streamed without upcast)
    targets: (N,)   int class ids
    weights: None, or 1-D class weights of length C.

    weights=None reduces to F.nll_loss(log_softmax(x), t) (plain mean), which
    equals the weighted path with all-ones class weights.
    """
    n, c = logits.shape
    itemsize = jnp.dtype(logits.dtype).itemsize
    if weights is None:
        weights = jnp.ones((c,), jnp.float32)
    elif weights.shape[0] != c:
        # TODO(synk): per-sample-weights branch ((nll_none * weights).mean())
        # is not lowered to Pallas here.
        raise NotImplementedError("per-sample weights branch not implemented")

    plan_bn, vmem_limit = _kernel_plan(n, c, itemsize)
    if block_n is None:
        block_n = plan_bn
    assert block_n % 8 == 0, "block_n must be a multiple of 8"

    num_blocks = pl.cdiv(n, block_n)

    targets2d = targets.astype(jnp.int32).reshape(n, 1)
    weights2d = weights.astype(jnp.float32).reshape(1, c)

    cost = pl.CostEstimate(
        flops=6 * n * c,
        transcendentals=n * c + n,
        bytes_accessed=int(n * c * itemsize + n * 4 + c * 4
                           + num_blocks * 8 * 128 * 4),
    )

    kernel = functools.partial(_weighted_ce_kernel, n)

    partials = pl.pallas_call(
        kernel,
        out_shape=jax.ShapeDtypeStruct((num_blocks * 8, 128), jnp.float32),
        grid=(num_blocks,),
        in_specs=[
            pl.BlockSpec((block_n, c), lambda i: (i, 0)),   # logits tile (streams)
            pl.BlockSpec((block_n, 1), lambda i: (i, 0)),   # targets tile
            pl.BlockSpec((1, c), lambda i: (0, 0)),         # class weights (shared)
        ],
        out_specs=pl.BlockSpec((8, 128), lambda i: (i, 0)),
        compiler_params=pltpu.CompilerParams(
            dimension_semantics=("parallel",),
            vmem_limit_bytes=vmem_limit,
        ),
        cost_estimate=cost,
    )(logits, targets2d, weights2d)

    num_total = jnp.sum(partials[:, 0])
    den_total = jnp.sum(partials[:, 1])
    # exact scalar divide (PyTorch also returns inf/nan if all picked weights are 0)
    return num_total / den_total


def _reference(logits, targets, weights):
    # plain-JAX reference of the PyTorch semantics, for validation only
    logp = jax.nn.log_softmax(logits.astype(jnp.float32), axis=1)
    n, _ = logits.shape
    picked = -logp[jnp.arange(n), targets]
    if weights is None:
        return jnp.mean(picked)
    wt = weights[targets]
    return jnp.sum(wt * picked) / jnp.sum(wt)


if __name__ == "__main__":
    key = jax.random.PRNGKey(0)
    k1, k2 = jax.random.split(key)
    # small shapes; N deliberately not a multiple of 8 to exercise the
    # unpadded / masked-tail-block path
    N, C = 50, 16
    logits = jax.random.normal(k1, (N, C), jnp.float32)
    targets = jax.random.randint(k2, (N,), 0, C, dtype=jnp.int32)
    class_weights = jnp.arange(1, C + 1, dtype=jnp.float32) / C

    loss_weighted = weighted_ce_loss(logits, targets, class_weights)
    loss_plain = weighted_ce_loss(logits, targets, None)
    # force a multi-block grid (partial last block) to validate tiling + masking
    loss_multiblk = weighted_ce_loss(logits, targets, class_weights, block_n=16)
    # bf16 streaming path (cast to f32 only in-kernel)
    loss_bf16 = weighted_ce_loss(logits.astype(jnp.bfloat16), targets, class_weights)
    jax.block_until_ready((loss_weighted, loss_plain, loss_multiblk, loss_bf16))

    ref_w = _reference(logits, targets, class_weights)
    ref_p = _reference(logits, targets, None)
    ref_b = _reference(logits.astype(jnp.bfloat16).astype(jnp.float32),
                       targets, class_weights)
    assert jnp.allclose(loss_weighted, ref_w, atol=1e-5, rtol=1e-5)
    assert jnp.allclose(loss_plain, ref_p, atol=1e-5, rtol=1e-5)
    assert jnp.allclose(loss_multiblk, ref_w, atol=1e-5, rtol=1e-5)
    assert jnp.allclose(loss_bf16, ref_b, atol=1e-4, rtol=1e-4)
    print("KERNEL_OK")
</pallas_src>

<mosaic_0001>
module attributes {stable_mosaic.version = 11 : i64} {
  func.func @_weighted_ce_kernel(%arg0: i32, %arg1: memref<56x16xf32, #tpu.memory_space<vmem>>, %arg2: memref<56x1xi32, #tpu.memory_space<vmem>>, %arg3: memref<1x16xf32, #tpu.memory_space<vmem>>, %arg4: memref<8x128xf32, #tpu.memory_space<vmem>>) attributes {dimension_semantics = [#tpu.dimension_semantics<parallel>], iteration_bounds = array<i64: 1>, scalar_prefetch = 0 : i64, scratch_operands = 0 : i64, tpu.core_type = #tpu.core_type<tc>, window_params = [{transform_indices = @transform_0, window_bounds = array<i64: 56, 16>}, {transform_indices = @transform_1, window_bounds = array<i64: 56, 1>}, {pipeline_mode = #tpu.pipeline_mode<synchronous>, transform_indices = @transform_2, window_bounds = array<i64: 1, 16>}, {transform_indices = @transform_3, window_bounds = array<i64: 8, 128>}]} {
    %c0 = arith.constant 0 : index
    %c0_0 = arith.constant 0 : index
    %0 = vector.load %arg1[%c0, %c0_0] : memref<56x16xf32, #tpu.memory_space<vmem>>, vector<56x16xf32>
    %c0_1 = arith.constant 0 : index
    %c0_2 = arith.constant 0 : index
    %1 = vector.load %arg2[%c0_1, %c0_2] : memref<56x1xi32, #tpu.memory_space<vmem>>, vector<56x1xi32>
    %c0_3 = arith.constant 0 : index
    %c0_4 = arith.constant 0 : index
    %2 = vector.load %arg3[%c0_3, %c0_4] : memref<1x16xf32, #tpu.memory_space<vmem>>, vector<1x16xf32>
    %cst = arith.constant dense<0xFF800000> : vector<56xf32>
    %3 = vector.multi_reduction <maximumf>, %0, %cst [1] : vector<56x16xf32> to vector<56xf32>
    %4 = vector.shape_cast %3 : vector<56xf32> to vector<56x1xf32>
    %5 = vector.broadcast %4 : vector<56x1xf32> to vector<56x16xf32>
    %6 = arith.subf %0, %5 : vector<56x16xf32>
    %7 = math.exp %6 : vector<56x16xf32>
    %cst_5 = arith.constant dense<0.000000e+00> : vector<56xf32>
    %8 = vector.multi_reduction <add>, %7, %cst_5 [1] : vector<56x16xf32> to vector<56xf32>
    %9 = vector.shape_cast %8 : vector<56xf32> to vector<56x1xf32>
    %10 = math.log %9 : vector<56x1xf32>
    %11 = tpu.iota {dimensions = array<i32: 1>} : vector<56x16xi32>
    %12 = vector.broadcast %1 : vector<56x1xi32> to vector<56x16xi32>
    %13 = arith.cmpi eq, %11, %12 : vector<56x16xi32>
    %cst_6 = arith.constant 0.000000e+00 : f32
    %14 = vector.broadcast %cst_6 : f32 to vector<56x16xf32>
    %15 = arith.select %13, %6, %14 : vector<56x16xi1>, vector<56x16xf32>
    %cst_7 = arith.constant dense<0.000000e+00> : vector<56xf32>
    %16 = vector.multi_reduction <add>, %15, %cst_7 [1] : vector<56x16xf32> to vector<56xf32>
    %17 = vector.shape_cast %16 : vector<56xf32> to vector<56x1xf32>
    %cst_8 = arith.constant 0.000000e+00 : f32
    %18 = vector.shape_cast %2 : vector<1x16xf32> to vector<1x16xf32>
    %19 = vector.broadcast %18 : vector<1x16xf32> to vector<56x16xf32>
    %20 = vector.broadcast %cst_8 : f32 to vector<56x16xf32>
    %21 = arith.select %13, %19, %20 : vector<56x16xi1>, vector<56x16xf32>
    %cst_9 = arith.constant dense<0.000000e+00> : vector<56xf32>
    %22 = vector.multi_reduction <add>, %21, %cst_9 [1] : vector<56x16xf32> to vector<56xf32>
    %23 = vector.shape_cast %22 : vector<56xf32> to vector<56x1xf32>
    %24 = arith.subf %10, %17 : vector<56x1xf32>
    %25 = tpu.iota {dimensions = array<i32: 0>} : vector<56x1xi32>
    %c56_i32 = arith.constant 56 : i32
    %26 = arith.muli %arg0, %c56_i32 : i32
    %27 = vector.broadcast %26 : i32 to vector<56x1xi32>
    %28 = arith.addi %27, %25 : vector<56x1xi32>
    %c50_i32 = arith.constant 50 : i32
    %29 = vector.broadcast %c50_i32 : i32 to vector<56x1xi32>
    %30 = arith.cmpi slt, %28, %29 : vector<56x1xi32>
    %cst_10 = arith.constant 0.000000e+00 : f32
    %31 = vector.broadcast %cst_10 : f32 to vector<56x1xf32>
    %32 = arith.select %30, %24, %31 : vector<56x1xi1>, vector<56x1xf32>
    %cst_11 = arith.constant 0.000000e+00 : f32
    %33 = vector.broadcast %cst_11 : f32 to vector<56x1xf32>
    %34 = arith.select %30, %23, %33 : vector<56x1xi1>, vector<56x1xf32>
    %35 = arith.mulf %34, %32 : vector<56x1xf32>
    %36 = vector.shape_cast %35 : vector<56x1xf32> to vector<1x56x1xf32>
    %cst_12 = arith.constant dense<0.000000e+00> : vector<1xf32>
    %37 = vector.multi_reduction <add>, %36, %cst_12 [1, 2] : vector<1x56x1xf32> to vector<1xf32>
    %38 = vector.shape_cast %37 : vector<1xf32> to vector<1x1x1xf32>
    %39 = vector.extract %38[0, 0, 0] : f32 from vector<1x1x1xf32>
    %40 = vector.shape_cast %34 : vector<56x1xf32> to vector<1x56x1xf32>
    %cst_13 = arith.constant dense<0.000000e+00> : vector<1xf32>
    %41 = vector.multi_reduction <add>, %40, %cst_13 [1, 2] : vector<1x56x1xf32> to vector<1xf32>
    %42 = vector.shape_cast %41 : vector<1xf32> to vector<1x1x1xf32>
    %43 = vector.extract %42[0, 0, 0] : f32 from vector<1x1x1xf32>
    %44 = tpu.iota {dimensions = array<i32: 0>} : vector<8x128xi32>
    %45 = tpu.iota {dimensions = array<i32: 1>} : vector<8x128xi32>
    %c0_i32 = arith.constant 0 : i32
    %46 = vector.broadcast %c0_i32 : i32 to vector<8x128xi32>
    %47 = arith.cmpi eq, %44, %46 : vector<8x128xi32>
    %c0_i32_14 = arith.constant 0 : i32
    %48 = vector.broadcast %c0_i32_14 : i32 to vector<8x128xi32>
    %49 = arith.cmpi eq, %45, %48 : vector<8x128xi32>
    %50 = arith.andi %47, %49 : vector<8x128xi1>
    %cst_15 = arith.constant 0.000000e+00 : f32
    %51 = vector.broadcast %39 : f32 to vector<8x128xf32>
    %52 = vector.broadcast %cst_15 : f32 to vector<8x128xf32>
    %53 = arith.select %50, %51, %52 : vector<8x128xi1>, vector<8x128xf32>
    %c0_i32_16 = arith.constant 0 : i32
    %54 = vector.broadcast %c0_i32_16 : i32 to vector<8x128xi32>
    %55 = arith.cmpi eq, %44, %54 : vector<8x128xi32>
    %c1_i32 = arith.constant 1 : i32
    %56 = vector.broadcast %c1_i32 : i32 to vector<8x128xi32>
    %57 = arith.cmpi eq, %45, %56 : vector<8x128xi32>
    %58 = arith.andi %55, %57 : vector<8x128xi1>
    %cst_17 = arith.constant 0.000000e+00 : f32
    %59 = vector.broadcast %43 : f32 to vector<8x128xf32>
    %60 = vector.broadcast %cst_17 : f32 to vector<8x128xf32>
    %61 = arith.select %58, %59, %60 : vector<8x128xi1>, vector<8x128xf32>
    %62 = arith.addf %53, %61 : vector<8x128xf32>
    %c0_18 = arith.constant 0 : index
    %c0_19 = arith.constant 0 : index
    %63 = vector.load %arg4[%c0_18, %c0_19] : memref<8x128xf32, #tpu.memory_space<vmem>>, vector<8x128xf32>
    tpu.vector_store %arg4[%c0_18, %c0_19], %62 {strides = array<i32>} : memref<8x128xf32, #tpu.memory_space<vmem>>, vector<8x128xf32>,
    return
  }
  func.func @transform_0(%arg0: i32) -> (i32, i32) {
    %c0_i32 = arith.constant 0 : i32
    %c0_i32_0 = arith.constant 0 : i32
    return %arg0, %c0_i32 : i32, i32
  }
  func.func @transform_1(%arg0: i32) -> (i32, i32) {
    %c0_i32 = arith.constant 0 : i32
    %c0_i32_0 = arith.constant 0 : i32
    return %arg0, %c0_i32 : i32, i32
  }
  func.func @transform_2(%arg0: i32) -> (i32, i32) {
    %c0_i32 = arith.constant 0 : i32
    %c0_i32_0 = arith.constant 0 : i32
    %c0_i32_1 = arith.constant 0 : i32
    return %c0_i32, %c0_i32_0 : i32, i32
  }
  func.func @transform_3(%arg0: i32) -> (i32, i32) {
    %c0_i32 = arith.constant 0 : i32
    %c0_i32_0 = arith.constant 0 : i32
    return %arg0, %c0_i32 : i32, i32
  }
}

</mosaic_0001>

<bundles_post_ra>
// kernel: tpu_custom_call.1
= control target key start
LH: loop header
LB: loop body
LE: loop exit
PB: predicated region body
PF: predicated region fallthrough
CT: control target
= control target key end

     0   :  { %vm30_vm0 = vcmask 130048   ;;  %v381_v6 = vmov 0   ;;  %s555_s0 = inlined_call_operand.vmem [shape: f32[50,16], index: 0, kind: input, shape index: {}]   ;;  %s556_s1 = inlined_call_operand.vmem [shape: s32[50,1], index: 1, kind: input, shape index: {}]   ;;  %s557_s2 = inlined_call_operand.vmem [shape: f32[1,16], index: 2, kind: input, shape index: {}]   ;;  %s558_s3 = inlined_call_operand.hbm [shape: f32[8,128], index: 3, kind: output, shape index: {}]  }
   0x1   :  { %v17_v0 = vld [vmem:[%s555_s0 + $0x10] sm:$0xff]  ;;  %v15_v1 = vld [vmem:[%s555_s0] sm:$0xff]  ;;  %v18_v2 = vld [vmem:[%s555_s0 + $0x18] sm:$0xff]  ;;  %329 = vset.pattern.permute.xlu1 %v381_v6  ;;  %330 = vset.pattern.permute.xlu0 %v381_v6 }
   0x2   :  { %v37_v3 = vsel %vm30_vm0, %v17_v0, -inf  ;;  %v31_v4 = vsel %vm30_vm0, %v15_v1, -inf  ;;  %v16_v5 = vld [vmem:[%s555_s0 + $0x8] sm:$0xff]  ;;  %v40_v7 = vsel %vm30_vm0, %v18_v2, -inf  ;;  %v19_v10 = vld [vmem:[%s555_s0 + $0x20] sm:$0xff] }
   0x3   :  { %38 = vmax.xlane.f32.xlu1 %v37_v3  ;;  %32 = vmax.xlane.f32.xlu0 %v31_v4  ;;  %v34_v8 = vsel %vm30_vm0, %v16_v5, -inf  ;;  %v20_v9 = vld [vmem:[%s555_s0 + $0x28] sm:$0xff] }
   0x4   :  { %8 = vsyncpa [#allocation3], 0  ;;  %v46_v11 = vsel %vm30_vm0, %v20_v9, -inf  ;;  %v43_v12 = vsel %vm30_vm0, %v19_v10, -inf  ;;  %v21_v13 = vld [vmem:[%s555_s0 + $0x30] sm:$0xff]  ;;  %v22_v15 = vld [vmem:[%s556_s1] sm:$0xff]  ;;  %v108_v30 = vlaneseq }
   0x5   :  { %v49_v14 = vsel %vm30_vm0, %v21_v13, -inf  ;;  %v24_v16 = vld [vmem:[%s556_s1 + $0x10] sm:$0xff]  ;;  %v25_v17 = vld [vmem:[%s556_s1 + $0x18] sm:$0xff]  ;;  %v23_v18 = vld [vmem:[%s556_s1 + $0x8] sm:$0xff]  ;;  %vm252_vm8 = vcmask 7168   ;;  %s382_s14 = smov [#allocation2]  }
   0x6   :  { %v26_v19 = vld [vmem:[%s556_s1 + $0x20] sm:$0xff]  ;;  %v27_v20 = vld [vmem:[%s556_s1 + $0x28] sm:$0xff]  ;;  %v28_v21 = vld [vmem:[%s556_s1 + $0x30] sm:$0xff]  ;;  %v457_v37 = vand.u32 127, %v108_v30  ;;  %s314_s15 = sshll.u32 %s382_s14, 4  ;;  %s315_s15 = int_to_ptr.vmem [resolvable:$true] %s314_s15 }
   0x7   :  { %41 = vmax.xlane.f32.xlu1 %v40_v7  ;;  %35 = vmax.xlane.f32.xlu0 %v34_v8  ;;  %v466_v41 = vld [vmem:[%s557_s2] ss:$0 sm:$0xff]  ;;  %s359_s16 = scalar_lea.vmem %s315_s15, 128  ;;  %p364_p1 = scmp.lt.s32.totalorder %s315_s15, %s315_s15 }
   0x8   :  { %vm298_vm11 = vcmp.eq.s32.totalorder %v457_v37, 0  ;;  %vm302_vm12 = vcmp.eq.s32.totalorder %v457_v37, 1  ;;  %p360_p0 = scmp.ne.s32.totalorder %s315_s15, %s359_s16  ;;  %p365_p2 = scmp.lt.s32.totalorder %s359_s16, %s359_s16 }
   0xa   :  { %p366_p3 = por %p365_p2, %p364_p1 }
   0xb   :  { %47 = vmax.xlane.f32.xlu1 %v46_v11  ;;  %44 = vmax.xlane.f32.xlu0 %v43_v12 }
   0xc   :  { %p367_p4 = pnand %p366_p3, %p360_p0 }
   0xf   :  { %50 = vmax.xlane.f32.xlu0 %v49_v14 }
  0x1c   :  { %111 = vperm.xlu1 %329, %v22_v15  }
  0x20   :  { %117 = vperm.xlu1 %329, %v24_v16  }
  0x24   :  { %120 = vperm.xlu1 %329, %v25_v17  }
  0x25   :  { %114 = vperm.xlu0 %330, %v23_v18  }
  0x28   :  { %123 = vperm.xlu1 %329, %v26_v19  }
  0x2c   :  { %126 = vperm.xlu1 %329, %v27_v20  }
  0x30   :  { %129 = vperm.xlu1 %329, %v28_v21  }
  0x8c   :  { %v39_v22 = vpop.xlane.xlu1 %38  ;;  %v33_v23 = vpop.xlane.xlu0 %32 }
  0x8d   :  { %v52_v24 = vsub.f32 %v15_v1, %v33_v23  ;;  %v54_v25 = vsub.f32 %v17_v0, %v39_v22 }
  0x8f   :  { %v59_v26 = vmul.f32 1.442695, %v52_v24  ;;  %v63_v31 = vmul.f32 1.442695, %v54_v25 }
  0x90   :  { %v42_v27 = vpop.xlane.xlu1 %41  ;;  %v36_v28 = vpop.xlane.xlu0 %35 }
  0x91   :  { %v53_v29 = vsub.f32 %v16_v5, %v36_v28  ;;  %v452_v32 = vsub.f32 %v18_v2, %v42_v27  ;;  %331 = vpow2.f32 %v59_v26 }
  0x92   :  { %333 = vpow2.f32 %v63_v31 }
  0x93   :  { %v61_v33 = vmul.f32 1.442695, %v53_v29  ;;  %v65_v38 = vmul.f32 1.442695, %v452_v32 }
  0x94   :  { %v48_v34 = vpop.xlane.xlu1 %47  ;;  %v45_v35 = vpop.xlane.xlu0 %44 }
  0x95   :  { %v454_v36 = vsub.f32 %v19_v10, %v45_v35  ;;  %v460_v39 = vsub.f32 %v20_v9, %v48_v34  ;;  %335 = vpow2.f32 %v61_v33 }
  0x96   :  { %337 = vpow2.f32 %v65_v38 }
  0x97   :  { %v67_v40 = vmul.f32 1.442695, %v454_v36  ;;  %v69_v45 = vmul.f32 1.442695, %v460_v39 }
  0x98   :  { %v112_v42 = vpop.permute.xlu1 %111  ;;  %v51_v43 = vpop.xlane.xlu0 %50 }
  0x99   :  { %vm131_vm1 = vcmp.eq.s32.totalorder %v457_v37, %v112_v42  ;;  %v469_v44 = vsub.f32 %v21_v13, %v51_v43  ;;  %339 = vpow2.f32 %v67_v40 }
  0x9a   :  { %v172_v46 = vsel %vm131_vm1, %v466_v41, 0.0  ;;  %v138_v47 = vsel %vm131_vm1, %v52_v24, 0.0  ;;  %341 = vpow2.f32 %v69_v45 }
  0x9b   :  { %v71_v48 = vmul.f32 1.442695, %v469_v44  ;;  %v179_v49 = vsel %vm30_vm0, %v172_v46, 0.0  ;;  %v145_v50 = vsel %vm30_vm0, %v138_v47, 0.0 }
  0x9c   :  { %v118_v51 = vpop.permute.xlu1 %117  ;;  %180 = vadd.xlane.f32.xlu0 %v179_v49  ;;  %146 = vadd.xlane.f32.xlu1 %v145_v50 }
  0x9d   :  { %vm133_vm2 = vcmp.eq.s32.totalorder %v457_v37, %v118_v51  ;;  %343 = vpow2.f32 %v71_v48 }
  0x9e   :  { %v140_v52 = vsel %vm133_vm2, %v54_v25, 0.0  ;;  %v332_v54 = vpop.eup %331  ;;  %v174_v14 = vsel %vm133_vm2, %v466_v41, 0.0 }
  0x9f   :  { %v151_v53 = vsel %vm30_vm0, %v140_v52, 0.0  ;;  %v334_v57 = vpop.eup %333  ;;  %v73_v58 = vsel %vm30_vm0, %v332_v54, 0.0  ;;  %v185_v17 = vsel %vm30_vm0, %v174_v14, 0.0 }
  0xa0   :  { %152 = vadd.xlane.f32.xlu1 %v151_v53  ;;  %v115_v55 = vpop.permute.xlu0 %114  ;;  %v121_v61 = vpop.permute.xlu1 %120  ;;  %v79_v63 = vsel %vm30_vm0, %v334_v57, 0.0 }
  0xa1   :  { %vm132_vm3 = vcmp.eq.s32.totalorder %v457_v37, %v115_v55  ;;  %vm134_vm4 = vcmp.eq.s32.totalorder %v457_v37, %v121_v61 }
  0xa2   :  { %v139_v56 = vsel %vm132_vm3, %v53_v29, 0.0  ;;  %v336_v60 = vpop.eup %335  ;;  %v173_v10 = vsel %vm132_vm3, %v466_v41, 0.0  ;;  %v141_v11 = vsel %vm134_vm4, %v452_v32, 0.0  ;;  %v175_v19 = vsel %vm134_vm4, %v466_v41, 0.0 }
  0xa3   :  { %v148_v59 = vsel %vm30_vm0, %v139_v56, 0.0  ;;  %v338_v62 = vpop.eup %337  ;;  %v76_v0 = vsel %vm30_vm0, %v336_v60, 0.0  ;;  %v182_v12 = vsel %vm30_vm0, %v173_v10, 0.0  ;;  %v154_v13 = vsel %vm30_vm0, %v141_v11, 0.0 }
  0xa4   :  { %74 = vadd.xlane.f32.xlu1 %v73_v58  ;;  %149 = vadd.xlane.f32.xlu0 %v148_v59  ;;  %v124_v2 = vpop.permute.xlu1 %123  ;;  %v82_v4 = vsel %vm30_vm0, %v338_v62, 0.0  ;;  %v188_v21 = vsel %vm30_vm0, %v175_v19, 0.0  ;;  %v532_v56 = vshrl.u32 %v108_v30, 7 }
  0xa5   :  { %vm135_vm5 = vcmp.eq.s32.totalorder %v457_v37, %v124_v2 }
  0xa6   :  { %v340_v1 = vpop.eup %339  ;;  %v142_v15 = vsel %vm135_vm5, %v454_v36, 0.0  ;;  %v176_v23 = vsel %vm135_vm5, %v466_v41, 0.0  ;;  %v214_v30 = vadd.s32 48, %v532_v56  ;;  %vm297_vm10 = vcmp.eq.s32.totalorder %v532_v56, 0 }
  0xa7   :  { %v342_v3 = vpop.eup %341  ;;  %v85_v5 = vsel %vm30_vm0, %v340_v1, 0.0  ;;  %v157_v18 = vsel %vm30_vm0, %v142_v15, 0.0  ;;  %v191_v25 = vsel %vm30_vm0, %v176_v23, 0.0  ;;  %vm299_vm13 = vmand %vm297_vm10, %vm298_vm11 }
  0xa8   :  { %80 = vadd.xlane.f32.xlu1 %v79_v63  ;;  %77 = vadd.xlane.f32.xlu0 %v76_v0  ;;  %v88_v7 = vsel %vm30_vm0, %v342_v3, 0.0  ;;  %v127_v9 = vpop.permute.xlu1 %126  ;;  %vm230_vm9 = vcmp.lt.s32.totalorder %v214_v30, 50  ;;  %vm303_vm14 = vmand %vm297_vm10, %vm302_vm12 }
  0xa9   :  { %vm136_vm6 = vcmp.eq.s32.totalorder %v457_v37, %v127_v9 }
  0xaa   :  { %v344_v6 = vpop.eup %343  ;;  %v143_v20 = vsel %vm136_vm6, %v460_v39, 0.0  ;;  %v177_v27 = vsel %vm136_vm6, %v466_v41, 0.0 }
  0xab   :  { %v91_v8 = vsel %vm30_vm0, %v344_v6, 0.0  ;;  %v160_v22 = vsel %vm30_vm0, %v143_v20, 0.0  ;;  %v194_v29 = vsel %vm30_vm0, %v177_v27, 0.0 }
  0xac   :  { %83 = vadd.xlane.f32.xlu1 %v82_v4  ;;  %86 = vadd.xlane.f32.xlu0 %v85_v5  ;;  %v130_v16 = vpop.permute.xlu1 %129 }
  0xad   :  { %vm137_vm7 = vcmp.eq.s32.totalorder %v457_v37, %v130_v16 }
  0xae   :  { %v144_v24 = vsel %vm137_vm7, %v469_v44, 0.0  ;;  %v178_v28 = vsel %vm137_vm7, %v466_v41, 0.0 }
  0xaf   :  { %v163_v26 = vsel %vm30_vm0, %v144_v24, 0.0  ;;  %v197_v31 = vsel %vm30_vm0, %v178_v28, 0.0 }
  0xb0   :  { %89 = vadd.xlane.f32.xlu1 %v88_v7  ;;  %92 = vadd.xlane.f32.xlu0 %v91_v8 }
  0xb4   :  { %183 = vadd.xlane.f32.xlu1 %v182_v12  ;;  %155 = vadd.xlane.f32.xlu0 %v154_v13 }
  0xb8   :  { %186 = vadd.xlane.f32.xlu1 %v185_v17  ;;  %158 = vadd.xlane.f32.xlu0 %v157_v18 }
  0xbc   :  { %189 = vadd.xlane.f32.xlu1 %v188_v21  ;;  %161 = vadd.xlane.f32.xlu0 %v160_v22 }
  0xc0   :  { %192 = vadd.xlane.f32.xlu1 %v191_v25  ;;  %164 = vadd.xlane.f32.xlu0 %v163_v26 }
  0xc4   :  { %195 = vadd.xlane.f32.xlu1 %v194_v29  ;;  %198 = vadd.xlane.f32.xlu0 %v197_v31 }
 0x125   :  { %v147_v32 = vpop.xlane.xlu1 %146  ;;  %v181_v33 = vpop.xlane.xlu0 %180 }
 0x126   :  { %v275_v4 = vsel %vm252_vm8, %v181_v33, 0.0 }
 0x129   :  { %v153_v34 = vpop.xlane.xlu1 %152 }
 0x12d   :  { %v75_v35 = vpop.xlane.xlu1 %74  ;;  %v150_v36 = vpop.xlane.xlu0 %149 }
 0x12e   :  { %345 = vlog2.f32 %v75_v35 }
 0x131   :  { %v81_v38 = vpop.xlane.xlu1 %80  ;;  %v78_v39 = vpop.xlane.xlu0 %77 }
 0x132   :  { %347 = vlog2.f32 %v81_v38 }
 0x133   :  { %349 = vlog2.f32 %v78_v39 }
 0x135   :  { %v84_v40 = vpop.xlane.xlu1 %83  ;;  %v87_v42 = vpop.xlane.xlu0 %86 }
 0x136   :  { %351 = vlog2.f32 %v84_v40 }
 0x137   :  { %353 = vlog2.f32 %v87_v42 }
 0x139   :  { %v90_v41 = vpop.xlane.xlu1 %89  ;;  %v93_v43 = vpop.xlane.xlu0 %92 }
 0x13a   :  { %355 = vlog2.f32 %v90_v41 }
 0x13b   :  { %v346_v44 = vpop.eup %345  ;;  %357 = vlog2.f32 %v93_v43 }
 0x13c   :  { %v95_v45 = vmul.f32 0.6931472, %v346_v44 }
 0x13d   :  { %v184_v46 = vpop.xlane.xlu1 %183  ;;  %v156_v47 = vpop.xlane.xlu0 %155 }
 0x13e   :  { %v200_v49 = vsub.f32 %v95_v45, %v147_v32  ;;  %v276_v61 = vsel %vm252_vm8, %v184_v46, 0.0 }
 0x13f   :  { %v348_v48 = vpop.eup %347  ;;  %v277_v10 = vadd.f32 %v276_v61, %v275_v4 }
 0x140   :  { %v350_v50 = vpop.eup %349  ;;  %v99_v51 = vmul.f32 0.6931472, %v348_v48  ;;  %v245_v59 = vmul.f32 %v200_v49, %v181_v33 }
 0x141   :  { %v97_v52 = vmul.f32 0.6931472, %v350_v50  ;;  %v187_v53 = vpop.xlane.xlu1 %186  ;;  %v159_v54 = vpop.xlane.xlu0 %158 }
 0x142   :  { %v202_v55 = vsub.f32 %v99_v51, %v153_v34  ;;  %v278_v6 = vsel %vm252_vm8, %v187_v53, 0.0  ;;  %v253_v8 = vsel %vm252_vm8, %v245_v59, 0.0 }
 0x143   :  { %v352_v57 = vpop.eup %351  ;;  %v201_v58 = vsub.f32 %v97_v52, %v150_v36  ;;  %v279_v18 = vadd.f32 %v278_v6, %v277_v10 }
 0x144   :  { %v354_v60 = vpop.eup %353  ;;  %v101_v62 = vmul.f32 0.6931472, %v352_v57  ;;  %v247_v0 = vmul.f32 %v202_v55, %v187_v53 }
 0x145   :  { %v246_v63 = vmul.f32 %v201_v58, %v184_v46  ;;  %v103_v1 = vmul.f32 0.6931472, %v354_v60  ;;  %v190_v2 = vpop.xlane.xlu1 %189  ;;  %v162_v3 = vpop.xlane.xlu0 %161 }
 0x146   :  { %v203_v5 = vsub.f32 %v101_v62, %v156_v47  ;;  %v280_v11 = vsel %vm252_vm8, %v190_v2, 0.0  ;;  %v256_v17 = vsel %vm252_vm8, %v247_v0, 0.0 }
 0x147   :  { %v356_v7 = vpop.eup %355  ;;  %v254_v9 = vsel %vm252_vm8, %v246_v63, 0.0  ;;  %v204_v14 = vsub.f32 %v103_v1, %v159_v54  ;;  %v281_v25 = vadd.f32 %v280_v11, %v279_v18 }
 0x148   :  { %v358_v12 = vpop.eup %357  ;;  %v255_v13 = vadd.f32 %v254_v9, %v253_v8  ;;  %v248_v15 = vmul.f32 %v203_v5, %v190_v2  ;;  %v105_v16 = vmul.f32 0.6931472, %v356_v7 }
 0x149   :  { %v193_v19 = vpop.xlane.xlu1 %192  ;;  %v107_v20 = vmul.f32 0.6931472, %v358_v12  ;;  %v165_v21 = vpop.xlane.xlu0 %164 }
 0x14a   :  { %v257_v22 = vadd.f32 %v256_v17, %v255_v13  ;;  %v258_v23 = vsel %vm252_vm8, %v248_v15, 0.0  ;;  %v249_v24 = vmul.f32 %v204_v14, %v193_v19  ;;  %v282_v26 = vsel %vm252_vm8, %v193_v19, 0.0 }
 0x14b   :  { %v206_v27 = vsub.f32 %v107_v20, %v165_v21  ;;  %v205_v29 = vsub.f32 %v105_v16, %v162_v3  ;;  %v283_v32 = vadd.f32 %v282_v26, %v281_v25 }
 0x14c   :  { %v259_v28 = vadd.f32 %v258_v23, %v257_v22  ;;  %v260_v31 = vsel %vm252_vm8, %v249_v24, 0.0 }
 0x14d   :  { %v196_v33 = vpop.xlane.xlu1 %195  ;;  %v199_v34 = vpop.xlane.xlu0 %198  ;;  %v237_v38 = vsel %vm230_vm9, %v206_v27, 0.0 }
 0x14e   :  { %v250_v35 = vmul.f32 %v205_v29, %v196_v33  ;;  %v284_v36 = vsel %vm252_vm8, %v196_v33, 0.0  ;;  %v244_v39 = vsel %vm230_vm9, %v199_v34, 0.0  ;;  %v261_v40 = vadd.f32 %v260_v31, %v259_v28 }
 0x14f   :  { %v285_v42 = vadd.f32 %v284_v36, %v283_v32  ;;  %v251_v41 = vmul.f32 %v244_v39, %v237_v38  ;;  %v286_v43 = vsel %vm252_vm8, %v244_v39, 0.0 }
 0x150   :  { %v262_v44 = vsel %vm252_vm8, %v250_v35, 0.0 }
 0x151   :  { %v287_v45 = vadd.f32 %v286_v43, %v285_v42  ;;  %v263_v46 = vadd.f32 %v262_v44, %v261_v40  ;;  %v264_v47 = vsel %vm252_vm8, %v251_v41, 0.0 }
 0x153   :  { %288 = vadd.xlane.f32.xlu0 %v287_v45  ;;  %v265_v48 = vadd.f32 %v264_v47, %v263_v46 }
 0x155   :  { %266 = vadd.xlane.f32.xlu1 %v265_v48 }
 0x1dc   :  { %v289_v49 = vpop.xlane.xlu0 %288 }
 0x1dd   :  { %v290_v50 = vrot.slane %v289_v49, 4 }
 0x1de   :  { %v267_v51 = vpop.xlane.xlu1 %266 }
 0x1df   :  { %v291_v52 = vadd.f32 %v290_v50, %v289_v49  ;;  %v268_v53 = vrot.slane %v267_v51, 4 }
 0x1e1   :  { %v292_v54 = vrot.slane %v291_v52, 2  ;;  %v269_v55 = vadd.f32 %v268_v53, %v267_v51 }
 0x1e3   :  { %v293_v57 = vadd.f32 %v292_v54, %v291_v52  ;;  %v270_v58 = vrot.slane %v269_v55, 2 }
 0x1e5   :  { %v271_v59 = vadd.f32 %v270_v58, %v269_v55  ;;  %v294_v60 = vrot.slane %v293_v57, 1 }
 0x1e7   :  { %v272_v61 = vrot.slane %v271_v59, 1  ;;  %v295_v63 = vadd.f32 %v294_v60, %v293_v57 }
 0x1e9   :  { %v273_v62 = vadd.f32 %v272_v61, %v271_v59 }
 0x1eb   :  { %323 = vpush %v273_v62 }
 0x1ec   :  { %325 = vpush %v295_v63 }
 0x21c   :  { %s324_s2 = spop %323 }
 0x21d   :  { %v300_v0 = vstv %s324_s2  ;;  %s326_s13 = spop %325 }
 0x21e   :  { %v301_v1 = vsel %vm299_vm13, %v300_v0, 0.0  ;;  %v304_v2 = vstv %s326_s13 }
 0x21f   :  { %v305_v3 = vsel %vm303_vm14, %v304_v2, 0.0 }
 0x220   :  { %v306_v4 = vadd.f32 %v305_v3, %v301_v1 }
 0x222   :  { %307 = vst [vmem:[#allocation2] sm:$0xff] %v306_v4 }
 0x223   :  { %370 = shalt.err (!%p367_p4)
}
 0x224   :  { %317 = dma.vmem_to_hbm [thread:$0]  %s315_s15, 128, %s558_s3, [#allocation3]  }
 0x225   :  { %379 = dma.done.wait [#allocation3], 128  }
 0x226   :  { %380 = vsyncadd [#allocation3], 4294967168 }
 0x227   :  { %321 = vsyncpa [#allocation3], 1 }

</bundles_post_ra>
